<compile_context>
chip_gen: v6e
topology: v6e:2x2x1
jax: 0.10.0
libtpu: 0.0.40
codegen_flags: <defaults>
</compile_context>

<pallas_src>
import functools

import jax
import jax.numpy as jnp
from jax.experimental import pallas as pl
from jax.experimental.pallas import tpu as pltpu


def _focal_loss_kernel(logits_ref, side_ref, out_ref, *, gamma, batch, tile_rows):
    """One batch tile per grid step; writes that tile's partial loss.

    logits_ref : (tb, C) logits in their native dtype
    side_ref   : (tb, 2) f32  [:, 0] = target index (exact float), [:, 1] = weight[target]
    out_ref    : (1, 1, 1) f32 partial loss for this tile
    """
    x = logits_ref[...].astype(jnp.float32)            # cast in-kernel (bf16 friendly)
    side = side_ref[...]                                # (tb, 2)
    tgt = side[:, 0:1].astype(jnp.int32)                # (tb, 1)
    cw = side[:, 1:2]                                   # (tb, 1)

    # zi = -x everywhere, +x at the target class (replaces the one-hot gather).
    col = jax.lax.broadcasted_iota(jnp.int32, x.shape, dimension=1)
    sign = jnp.where(col == tgt, 1.0, -1.0)
    zi = x * sign

    # log(sigmoid(zi)) = -softplus(-zi)   (numerically stable, one EUP chain)
    log_pis = -jax.nn.softplus(-zi)

    # (1 - sigmoid(zi))**gamma, reusing the softplus result.
    if gamma == 0.0:
        contrib = log_pis
    elif float(gamma).is_integer() and 0 < gamma <= 4:
        q = 1.0 - jnp.exp(log_pis)                      # = 1 - sigmoid(zi)
        first = q
        for _ in range(int(gamma) - 1):                 # integer gamma: VPU multiplies
            first = first * q
        contrib = first * log_pis
    else:
        first = jnp.exp(-gamma * jax.nn.softplus(zi))   # general gamma (stable)
        contrib = first * log_pis

    # Lane reduce first, then apply the per-row class weight (saves VPU muls).
    row = jnp.sum(contrib, axis=1, keepdims=True)       # (tb, 1)
    row = cw * row

    # Mask rows of the ragged last tile (block may run past B; OOB garbage -> 0,
    # jnp.where selects so NaN/Inf cannot leak through).
    base = pl.program_id(0) * tile_rows
    rid = base + jax.lax.broadcasted_iota(jnp.int32, row.shape, dimension=0)
    row = jnp.where(rid < batch, row, 0.0)

    tile = jnp.sum(row, axis=0, keepdims=True)          # (1, 1)
    out_ref[...] = (-tile).reshape(1, 1, 1)             # per-tile partial loss


def focal_loss(logits, target, weight, gamma=1.0, block_rows=None):
    """Pallas FocalLoss forward. logits:(B,C), target:(B,) int, weight:(C,)."""
    assert gamma >= 0
    B, C = logits.shape
    target = target.astype(jnp.int32)
    class_w = weight.astype(jnp.float32)[target]                    # (B,) tiny gather

    # One fused per-row side input: [target, weight[target]].  The float
    # encoding of target is exact for C < 2**24.
    side = jnp.stack([target.astype(jnp.float32), class_w], axis=1)  # (B, 2)

    # Byte-sized batch tile: ~4 MiB of logits per block (double buffered ->
    # ~8 MiB, under v7x's default scoped VMEM; near the HBM-roofline sweet spot).
    bytes_per_row = C * jnp.dtype(logits.dtype).itemsize
    target_block_bytes = 4 * 1024 * 1024
    max_rows = max(8, target_block_bytes // max(bytes_per_row, 1))
    if block_rows is not None:
        tb = int(block_rows)
    elif B <= max_rows:
        tb = B                         # single full-extent block (any B allowed)
    else:
        tb = (max_rows // 8) * 8       # sublane dim must be a multiple of 8
    n_tiles = pl.cdiv(B, tb)

    partials = pl.pallas_call(
        functools.partial(_focal_loss_kernel, gamma=float(gamma), batch=B,
                          tile_rows=tb),
        out_shape=jax.ShapeDtypeStruct((n_tiles, 1, 1), jnp.float32),
        grid=(n_tiles,),
        in_specs=[
            pl.BlockSpec((tb, C), lambda i: (i, 0)),   # full (unpadded) class dim
            pl.BlockSpec((tb, 2), lambda i: (i, 0)),
        ],
        out_specs=pl.BlockSpec((1, 1, 1), lambda i: (i, 0, 0)),
        compiler_params=pltpu.CompilerParams(
            dimension_semantics=("parallel",),         # independent tiles -> both v7x TCs
        ),
        cost_estimate=pl.CostEstimate(
            flops=6 * B * C,
            transcendentals=2 * B * C,
            bytes_accessed=B * bytes_per_row + B * 8 + n_tiles * 4,
        ),
    )(logits, side)

    return jnp.sum(partials)


def focal_loss_ref(logits, target, weight, gamma=1.0):
    """Pure-JAX reference matching the PyTorch module exactly."""
    B, C = logits.shape
    zi = -logits.astype(jnp.float32)
    zi = zi.at[jnp.arange(B), target].multiply(-1.0)
    pis = jax.nn.sigmoid(zi)
    first = (1.0 - pis) ** gamma
    second = jnp.log(pis)
    multipled = jnp.einsum("bj,bj->b", first, second)
    class_weights = weight[target].astype(jnp.float32)
    return -jnp.dot(class_weights, multipled)


if __name__ == "__main__":
    key = jax.random.PRNGKey(0)
    k1, k2, k3 = jax.random.split(key, 3)

    B, C = 8, 32          # batch=8, num_classes=32
    gamma = 2.0

    logits = jax.random.normal(k1, (B, C), dtype=jnp.float32)
    target = jax.random.randint(k2, (B,), 0, C, dtype=jnp.int32)
    weight = jax.random.uniform(k3, (C,), dtype=jnp.float32, minval=0.5, maxval=1.5)

    loss = jax.block_until_ready(focal_loss(logits, target, weight, gamma=gamma))
    ref = focal_loss_ref(logits, target, weight, gamma=gamma)
    assert jnp.allclose(loss, ref, rtol=1e-5, atol=1e-5), (loss, ref)

    # Multi-tile / ragged-tail path (forced small block): exercises the parallel
    # partial sums and the in-kernel row mask.
    B2 = 20
    logits2 = jax.random.normal(k1, (B2, C), dtype=jnp.float32)
    target2 = jax.random.randint(k2, (B2,), 0, C, dtype=jnp.int32)
    loss2 = jax.block_until_ready(
        focal_loss(logits2, target2, weight, gamma=gamma, block_rows=8))
    ref2 = focal_loss_ref(logits2, target2, weight, gamma=gamma)
    assert jnp.allclose(loss2, ref2, rtol=1e-5, atol=1e-5), (loss2, ref2)

    print("KERNEL_OK")
</pallas_src>

<mosaic_0001>
module attributes {stable_mosaic.version = 11 : i64} {
  func.func @_focal_loss_kernel(%arg0: i32, %arg1: memref<8x32xf32, #tpu.memory_space<vmem>>, %arg2: memref<8x2xf32, #tpu.memory_space<vmem>>, %arg3: memref<1x1x1xf32, #tpu.memory_space<vmem>>) attributes {dimension_semantics = [#tpu.dimension_semantics<parallel>], iteration_bounds = array<i64: 1>, scalar_prefetch = 0 : i64, scratch_operands = 0 : i64, tpu.core_type = #tpu.core_type<tc>, window_params = [{transform_indices = @transform_0, window_bounds = array<i64: 8, 32>}, {transform_indices = @transform_1, window_bounds = array<i64: 8, 2>}, {transform_indices = @transform_2, window_bounds = array<i64: 1, 1, 1>}]} {
    %c0 = arith.constant 0 : index
    %c0_0 = arith.constant 0 : index
    %0 = vector.load %arg1[%c0, %c0_0] : memref<8x32xf32, #tpu.memory_space<vmem>>, vector<8x32xf32>
    %c0_1 = arith.constant 0 : index
    %c0_2 = arith.constant 0 : index
    %1 = vector.load %arg2[%c0_1, %c0_2] : memref<8x2xf32, #tpu.memory_space<vmem>>, vector<8x2xf32>
    %2 = vector.extract_strided_slice %1 {offsets = [0, 0], sizes = [8, 1], strides = [1, 1]} : vector<8x2xf32> to vector<8x1xf32>
    %3 = arith.fptosi %2 : vector<8x1xf32> to vector<8x1xi32>
    %4 = vector.extract_strided_slice %1 {offsets = [0, 1], sizes = [8, 1], strides = [1, 1]} : vector<8x2xf32> to vector<8x1xf32>
    %5 = tpu.iota {dimensions = array<i32: 1>} : vector<8x32xi32>
    %6 = vector.broadcast %3 : vector<8x1xi32> to vector<8x32xi32>
    %7 = arith.cmpi eq, %5, %6 : vector<8x32xi32>
    %cst = arith.constant 1.000000e+00 : f32
    %cst_3 = arith.constant -1.000000e+00 : f32
    %8 = vector.broadcast %cst : f32 to vector<8x32xf32>
    %9 = vector.broadcast %cst_3 : f32 to vector<8x32xf32>
    %10 = arith.select %7, %8, %9 : vector<8x32xi1>, vector<8x32xf32>
    %11 = arith.mulf %0, %10 : vector<8x32xf32>
    %cst_4 = arith.constant 0.000000e+00 : f32
    %12 = vector.broadcast %cst_4 : f32 to vector<8x32xf32>
    %13 = arith.subf %12, %11 : vector<8x32xf32>
    %cst_5 = arith.constant 0.000000e+00 : f32
    %14 = vector.broadcast %cst_5 : f32 to vector<8x32xf32>
    %15 = arith.maximumf %13, %14 : vector<8x32xf32>
    %16 = vector.broadcast %cst_5 : f32 to vector<8x32xf32>
    %17 = arith.subf %13, %16 : vector<8x32xf32>
    %18 = arith.cmpf one, %17, %17 : vector<8x32xf32>
    %19 = vector.broadcast %cst_5 : f32 to vector<8x32xf32>
    %20 = arith.addf %13, %19 : vector<8x32xf32>
    %21 = math.absf %17 : vector<8x32xf32>
    %cst_6 = arith.constant 0.000000e+00 : f32
    %22 = vector.broadcast %cst_6 : f32 to vector<8x32xf32>
    %23 = arith.subf %22, %21 : vector<8x32xf32>
    %24 = math.exp %23 : vector<8x32xf32>
    %25 = math.log1p %24 : vector<8x32xf32>
    %26 = arith.addf %15, %25 : vector<8x32xf32>
    %27 = arith.select %18, %20, %26 : vector<8x32xi1>, vector<8x32xf32>
    %cst_7 = arith.constant 0.000000e+00 : f32
    %28 = vector.broadcast %cst_7 : f32 to vector<8x32xf32>
    %29 = arith.subf %28, %27 : vector<8x32xf32>
    %30 = math.exp %29 : vector<8x32xf32>
    %cst_8 = arith.constant 1.000000e+00 : f32
    %31 = vector.broadcast %cst_8 : f32 to vector<8x32xf32>
    %32 = arith.subf %31, %30 : vector<8x32xf32>
    %33 = arith.mulf %32, %32 : vector<8x32xf32>
    %34 = arith.mulf %33, %29 : vector<8x32xf32>
    %cst_9 = arith.constant dense<0.000000e+00> : vector<8xf32>
    %35 = vector.multi_reduction <add>, %34, %cst_9 [1] : vector<8x32xf32> to vector<8xf32>
    %36 = vector.shape_cast %35 : vector<8xf32> to vector<8x1xf32>
    %37 = arith.mulf %4, %36 : vector<8x1xf32>
    %c8_i32 = arith.constant 8 : i32
    %38 = arith.muli %arg0, %c8_i32 : i32
    %39 = tpu.iota {dimensions = array<i32: 0>} : vector<8x1xi32>
    %40 = vector.broadcast %38 : i32 to vector<8x1xi32>
    %41 = arith.addi %40, %39 : vector<8x1xi32>
    %c8_i32_10 = arith.constant 8 : i32
    %42 = vector.broadcast %c8_i32_10 : i32 to vector<8x1xi32>
    %43 = arith.cmpi slt, %41, %42 : vector<8x1xi32>
    %cst_11 = arith.constant 0.000000e+00 : f32
    %44 = vector.broadcast %cst_11 : f32 to vector<8x1xf32>
    %45 = arith.select %43, %37, %44 : vector<8x1xi1>, vector<8x1xf32>
    %cst_12 = arith.constant dense<0.000000e+00> : vector<1xf32>
    %46 = vector.multi_reduction <add>, %45, %cst_12 [0] : vector<8x1xf32> to vector<1xf32>
    %47 = vector.shape_cast %46 : vector<1xf32> to vector<1x1xf32>
    %cst_13 = arith.constant 0.000000e+00 : f32
    %48 = vector.broadcast %cst_13 : f32 to vector<1x1xf32>
    %49 = arith.subf %48, %47 : vector<1x1xf32>
    %50 = vector.shape_cast %49 : vector<1x1xf32> to vector<1x1x1xf32>
    %c0_14 = arith.constant 0 : index
    %c0_15 = arith.constant 0 : index
    %c0_16 = arith.constant 0 : index
    %51 = vector.load %arg3[%c0_14, %c0_15, %c0_16] : memref<1x1x1xf32, #tpu.memory_space<vmem>>, vector<1x1x1xf32>
    tpu.vector_store %arg3[%c0_14, %c0_15, %c0_16], %50 {strides = array<i32>} : memref<1x1x1xf32, #tpu.memory_space<vmem>>, vector<1x1x1xf32>,
    return
  }
  func.func @transform_0(%arg0: i32) -> (i32, i32) {
    %c0_i32 = arith.constant 0 : i32
    %c0_i32_0 = arith.constant 0 : i32
    return %arg0, %c0_i32 : i32, i32
  }
  func.func @transform_1(%arg0: i32) -> (i32, i32) {
    %c0_i32 = arith.constant 0 : i32
    %c0_i32_0 = arith.constant 0 : i32
    return %arg0, %c0_i32 : i32, i32
  }
  func.func @transform_2(%arg0: i32) -> (i32, i32, i32) {
    %c0_i32 = arith.constant 0 : i32
    %c0_i32_0 = arith.constant 0 : i32
    %c0_i32_1 = arith.constant 0 : i32
    return %arg0, %c0_i32, %c0_i32_0 : i32, i32, i32
  }
}

</mosaic_0001>

<bundles_post_ra>
// kernel: tpu_custom_call.1
= control target key start
LH: loop header
LB: loop body
LE: loop exit
PB: predicated region body
PF: predicated region fallthrough
CT: control target
= control target key end

     0   :  { %s152_s0 = inlined_call_operand.vmem [shape: f32[8,32], index: 0, kind: input, shape index: {}]   ;;  %s153_s1 = inlined_call_operand.vmem [shape: f32[8,2], index: 1, kind: input, shape index: {}]   ;;  %s154_s2 = inlined_call_operand.hbm [shape: f32[1,1,1], index: 2, kind: output, shape index: {}]  }
   0x1   :  { %v13_v0 = vld [vmem:[%s153_s1] sm:$0xff] }
   0x2   :  { %7 = vsyncpa [#allocation3], 0  ;;  %v124_v1 = vmov 0   ;;  %v89_v2 = vtrunc.f32 %v13_v0  ;;  %v15_v4 = vlaneseq  ;;  %v12_v7 = vld [vmem:[%s152_s0] sm:$0xff]  ;;  %v125_v8 = vmov -1.0   ;;  %s126_s0 = smov 127  }
   0x3   :  { %95 = vset.pattern.permute.xlu0 %v124_v1  ;;  %vm48_vm3 = vcmask 261120   ;;  %vm60_vm4 = vcmask 15368   ;;  %s127_s1 = smov [#allocation2]   ;;  %vm73_vm5 = vcmask 0  }
   0x4   :  { %v90_v3 = vcvt.f32.s32 %v89_v2  ;;  %v16_v5 = vand.u32 127, %v15_v4  ;;  %s81_s13 = sshll.u32 %s127_s1, 4  ;;  %s82_s13 = int_to_ptr.vmem [resolvable:$true] %s81_s13 }
   0x5   :  { %s102_s14 = scalar_lea.vmem %s82_s13, 16  ;;  %s106_s15 = scalar_lea.vmem %s82_s13, 32 }
   0x6   :  { %18 = vperm.xlu0 %95, %v90_v3   ;;  %p103_p0 = scmp.ne.s32.totalorder %s82_s13, %s102_s14  ;;  %p107_p1 = scmp.lt.s32.totalorder %s82_s13, %s82_s13 }
   0x7   :  { %p108_p2 = scmp.lt.s32.totalorder %s106_s15, %s102_s14 }
   0x9   :  { %p109_p3 = por %p108_p2, %p107_p1 }
   0xb   :  { %p110_p4 = pnand %p109_p3, %p103_p0 }
  0x81   :  { %v19_v6 = vpop.permute.xlu0 %18 }
  0x82   :  { %vm20_vm0 = vcmp.eq.s32.totalorder %v16_v5, %v19_v6 }
  0x83   :  { %v21_v9 = vsel %vm20_vm0, 1.0, %v125_v8 }
  0x84   :  { %v22_v10 = vmul.f32 %v21_v9, %v12_v7 }
  0x86   :  { %v23_v11 = vsub.f32 0.0, %v22_v10 }
  0x88   :  { %v27_v12 = vand.u32 2147483647, %v23_v11  ;;  %v24_v23 = vmax.f32 %v23_v11, 0.0  ;;  %vm25_vm2 = vcmp.ne.f32.partialorder %v23_v11, %v23_v11 }
  0x8a   :  { %v28_v13 = vsub.f32 0.0, %v27_v12 }
  0x8c   :  { %v29_v14 = vmul.f32 1.442695, %v28_v13 }
  0x8e   :  { %96 = vpow2.f32 %v29_v14 }
  0x9b   :  { %v97_v15 = vpop.eup %96 }
  0x9c   :  { %v31_v16 = vadd.f32 1.0, %v97_v15  ;;  %v34_v17 = vmul.f32 -0.5, %v97_v15  ;;  %v37_v19 = vand.u32 2147483647, %v97_v15 }
  0x9e   :  { %98 = vlog2.f32 %v31_v16  ;;  %v35_v18 = vadd.f32 1.0, %v34_v17  ;;  %vm38_vm1 = vcmp.lt.f32.partialorder %v37_v19, 0.0004427343 }
  0xa0   :  { %v36_v22 = vmul.f32 %v97_v15, %v35_v18 }
  0xab   :  { %v99_v20 = vpop.eup %98 }
  0xac   :  { %v33_v21 = vmul.f32 0.6931472, %v99_v20 }
  0xae   :  { %v39_v24 = vsel %vm38_vm1, %v36_v22, %v33_v21 }
  0xaf   :  { %v40_v25 = vadd.f32 %v39_v24, %v24_v23 }
  0xb1   :  { %v41_v26 = vsel %vm25_vm2, %v23_v11, %v40_v25 }
  0xb2   :  { %v42_v27 = vsub.f32 0.0, %v41_v26 }
  0xb4   :  { %v43_v28 = vmul.f32 1.442695, %v42_v27 }
  0xb6   :  { %100 = vpow2.f32 %v43_v28 }
  0xc3   :  { %v101_v29 = vpop.eup %100 }
  0xc4   :  { %v45_v30 = vsub.f32 1.0, %v101_v29 }
  0xc6   :  { %v46_v31 = vmul.f32 %v45_v30, %v45_v30 }
  0xc8   :  { %v47_v32 = vmul.f32 %v46_v31, %v42_v27 }
  0xca   :  { %v49_v33 = vsel %vm48_vm3, %v47_v32, 0.0 }
  0xcb   :  { %50 = vadd.xlane.f32.xlu0 %v49_v33 }
 0x154   :  { %v51_v34 = vpop.xlane.xlu0 %50 }
 0x155   :  { %v52_v35 = vmul.f32 %v51_v34, %v13_v0 }
 0x157   :  { %v61_v36 = vsel %vm60_vm4, %v52_v35, 0.0 }
 0x158   :  { %v62_v37 = vrot.slane %v61_v36, 4 }
 0x15a   :  { %v63_v38 = vadd.f32 %v62_v37, %v61_v36 }
 0x15c   :  { %v64_v39 = vrot.slane %v63_v38, 2 }
 0x15e   :  { %v65_v40 = vadd.f32 %v64_v39, %v63_v38 }
 0x160   :  { %v66_v41 = vrot.slane %v65_v40, 1 }
 0x162   :  { %v67_v42 = vadd.f32 %v66_v41, %v65_v40 }
 0x164   :  { %v68_v43 = vsub.f32 0.0, %v67_v42 }
 0x166   :  { %70 = vrot.lane.b32.xlu1 %v68_v43, %s126_s0 }
 0x1d8   :  { %v71_v44 = vpop.permute.xlu1 %70 }
 0x1d9   :  { %74 = vst.msk [vmem:[#allocation2] sm:$0x1] %vm73_vm5, %v71_v44 }
 0x1da   :  { %113 = shalt.err (!%p110_p4)
}
 0x1db   :  { %84 = dma.vmem_to_hbm [thread:$0]  %s82_s13, 16, %s154_s2, [#allocation3]  }
 0x1dc   :  { %122 = dma.done.wait [#allocation3], 16  }
 0x1dd   :  { %123 = vsyncadd [#allocation3], 4294967280 }
 0x1de   :  { %88 = vsyncpa [#allocation3], 1 }

</bundles_post_ra>
